<compile_context>
chip_gen: v6e
topology: v6e:2x2x1
jax: 0.10.0
libtpu: 0.0.40
codegen_flags: <defaults>
</compile_context>

<pallas_src>
import functools

import jax
import jax.numpy as jnp
from jax.experimental import pallas as pl
from jax.experimental.pallas import tpu as pltpu


def _round_up(x: int, m: int) -> int:
    return ((x + m - 1) // m) * m


# ---------------------------------------------------------------------------
# Kernel
# ---------------------------------------------------------------------------
def qmlp_kernel(x_ref, w_ref, b_ref, o_ref, *, in_features, in_pad):
    """Fused 5-layer MLP on one (TM, in_features) batch tile.

    x_ref : (TM, in_features)     f32   batch tile (pipelined over the grid)
    w_ref : (in_pad + 256, 128)   bf16  packed weight slab (VMEM-resident)
    b_ref : (5, 128)              f32   packed biases      (VMEM-resident)
    o_ref : (TM, 128)             bf16  lane-dense output tile
                                        (cols >= action_dim are exact zeros)
    """
    h = x_ref[...]  # f32

    def layer(h, row_off, k, bias_idx, relu):
        w = w_ref[row_off:row_off + k, :]                  # static slice, bf16
        acc = jnp.dot(h.astype(jnp.bfloat16), w,
                      preferred_element_type=jnp.float32)  # MXU, f32 accumulate
        acc = acc + b_ref[bias_idx:bias_idx + 1, :]        # (1,128) lane broadcast
        if relu:
            acc = jnp.maximum(acc, 0.0)
        return acc

    # Zero-padded output lanes + zero bias pad keep the extra lanes at 0, so
    # slicing h back down to the true width before the next matmul is exact.
    h = layer(h,          0,            in_features, 0, True)   # in -> 128
    h = layer(h,          in_pad,       128,         1, True)   # 128 -> 64
    h = layer(h[:, :64],  in_pad + 128, 64,          2, True)   # 64  -> 32
    h = layer(h[:, :32],  in_pad + 192, 32,          3, True)   # 32  -> 32
    h = layer(h[:, :32],  in_pad + 224, 32,          4, False)  # 32  -> action_dim

    o_ref[...] = h.astype(jnp.bfloat16)  # lane-dense bf16 store (half the HBM bytes)


# ---------------------------------------------------------------------------
# Wrapper
# ---------------------------------------------------------------------------
def qmlp_forward(x, packed_w, packed_b, *, action_dim, block_batch=8192):
    """x: [B, in_features] f32.  packed_w/packed_b from pack_qmlp_params."""
    B, in_features = x.shape
    in_pad = packed_w.shape[0] - 256  # rows reserved for W1

    # --- batch-tile / grid selection -------------------------------------
    if B < 8:
        # Full-array block: always a legal block shape, single grid step.
        TM, nsteps = B, 1
    else:
        TM = _round_up(min(block_batch, B), 8)   # always a multiple of 8
        nsteps = pl.cdiv(B, TM)
        if nsteps % 2 == 1 and B >= 16:
            # v7x has 2 TensorCores: avoid 1-step or odd-step grids so the
            # "parallel" grid axis load-balances.  No effect on v5e/v6e.
            TM = _round_up(pl.cdiv(B, nsteps + 1), 8)
            nsteps = pl.cdiv(B, TM)

    out = pl.pallas_call(
        functools.partial(qmlp_kernel, in_features=in_features, in_pad=in_pad),
        out_shape=jax.ShapeDtypeStruct((B, 128), jnp.bfloat16),
        grid_spec=pltpu.PrefetchScalarGridSpec(
            num_scalar_prefetch=0,
            grid=(nsteps,),
            in_specs=[
                # batch tile, double-buffered over the grid; ragged tail block
                # is clipped by Pallas (no wrapper-side pad copy of x).
                pl.BlockSpec((TM, in_features), lambda i: (i, 0)),
                # packed parameters: constant index_map -> DMA'd once, resident
                pl.BlockSpec(packed_w.shape, lambda i: (0, 0)),
                pl.BlockSpec(packed_b.shape, lambda i: (0, 0)),
            ],
            out_specs=pl.BlockSpec((TM, 128), lambda i: (i, 0)),
        ),
        compiler_params=pltpu.CompilerParams(
            dimension_semantics=("parallel",),      # megacore sharding on v7x
            vmem_limit_bytes=48 * 1024 * 1024,      # v5e default (16 MiB) is too
                                                    # small for TM=8192; 48 MiB is
                                                    # safe on v5e/v6e/v7x.
        ),
    )(x, packed_w, packed_b)

    # Strip lane padding (cols >= action_dim are exact zeros) and return f32.
    return out[:B, :action_dim].astype(jnp.float32)


# ---------------------------------------------------------------------------
# Parameter construction / packing
# ---------------------------------------------------------------------------
def init_qmlp_params(key, in_features, action_dim):
    """nn.Linear-style init; weights stored as [fan_in, fan_out], biases [fan_out]."""
    dims = [in_features, 128, 64, 32, 32, action_dim]
    weights, biases = [], []
    for i in range(5):
        fan_in, fan_out = dims[i], dims[i + 1]
        key, kw, kb = jax.random.split(key, 3)
        bound = fan_in ** -0.5
        weights.append(jax.random.uniform(kw, (fan_in, fan_out), jnp.float32, -bound, bound))
        biases.append(jax.random.uniform(kb, (fan_out,), jnp.float32, -bound, bound))
    return weights, biases


def pack_qmlp_params(weights, biases):
    """Pack 5 (W, b) pairs into one bf16 weight slab + one f32 bias block.

    Slab rows (fan_in at TRUE size, 16-row aligned offsets for bf16 tiling):
        [W1: rows 0..in_features-1 (in_pad reserved)]
        [W2: 128 rows] [W3: 64 rows] [W4: 32 rows] [W5: 32 rows]
    Every fan_out is zero-padded to 128 lanes; biases zero-padded likewise.
    Total rows = in_pad + 256.
    """
    in_features = weights[0].shape[0]
    in_pad = _round_up(in_features, 16)
    row_sizes = [in_pad, 128, 64, 32, 32]

    slab = jnp.zeros((in_pad + 256, 128), jnp.bfloat16)
    bias_blk = jnp.zeros((5, 128), jnp.float32)
    off = 0
    for i in range(5):
        fi, fo = weights[i].shape
        slab = slab.at[off:off + fi, :fo].set(weights[i].astype(jnp.bfloat16))
        bias_blk = bias_blk.at[i, :fo].set(biases[i].astype(jnp.float32))
        off += row_sizes[i]
    return slab, bias_blk


# ---------------------------------------------------------------------------
# Pure-JAX reference (same bf16-weight / bf16-activation / f32-accumulate
# numerics as the kernel).  vs a pure-f32 torch QMLP expect ~1e-2 rel error.
# ---------------------------------------------------------------------------
def qmlp_reference(x, weights, biases):
    h = x.astype(jnp.float32)
    for i in range(5):
        w = weights[i].astype(jnp.bfloat16)
        h = jnp.dot(h.astype(jnp.bfloat16), w,
                    preferred_element_type=jnp.float32) + biases[i]
        if i < 4:
            h = jnp.maximum(h, 0.0)
    return h


if __name__ == "__main__":
    key = jax.random.PRNGKey(0)
    in_features, action_dim = 16, 4

    key, kx_small, kx_big = jax.random.split(key, 3)
    weights, biases = init_qmlp_params(key, in_features, action_dim)
    packed_w, packed_b = pack_qmlp_params(weights, biases)

    # Small-batch check (single full-array block).
    x_small = jax.random.normal(kx_small, (2, in_features), jnp.float32)
    out_small = jax.block_until_ready(
        qmlp_forward(x_small, packed_w, packed_b, action_dim=action_dim))
    ref_small = qmlp_reference(x_small, weights, biases)
    assert out_small.shape == (2, action_dim)
    assert jnp.allclose(out_small, ref_small, atol=1e-2, rtol=1e-2), (out_small, ref_small)

    # Multi-tile grid + ragged (non-multiple-of-TM) batch check: B=2500 splits
    # into an even 2-step grid with a clipped tail block (no pad copy of x).
    x_big = jax.random.normal(kx_big, (2500, in_features), jnp.float32)
    out_big = jax.block_until_ready(
        qmlp_forward(x_big, packed_w, packed_b, action_dim=action_dim))
    ref_big = qmlp_reference(x_big, weights, biases)
    assert out_big.shape == (2500, action_dim)
    assert jnp.allclose(out_big, ref_big, atol=1e-2, rtol=1e-2)

    print("KERNEL_OK")
</pallas_src>

<mosaic_0001>
module attributes {stable_mosaic.version = 11 : i64} {
  func.func @qmlp_kernel(%arg0: i32, %arg1: memref<2x16xf32, #tpu.memory_space<vmem>>, %arg2: memref<272x128xbf16, #tpu.memory_space<vmem>>, %arg3: memref<5x128xf32, #tpu.memory_space<vmem>>, %arg4: memref<2x128xbf16, #tpu.memory_space<vmem>>) attributes {dimension_semantics = [#tpu.dimension_semantics<parallel>], iteration_bounds = array<i64: 1>, scalar_prefetch = 0 : i64, scratch_operands = 0 : i64, tpu.core_type = #tpu.core_type<tc>, window_params = [{transform_indices = @transform_0, window_bounds = array<i64: 2, 16>}, {pipeline_mode = #tpu.pipeline_mode<synchronous>, transform_indices = @transform_1, window_bounds = array<i64: 272, 128>}, {pipeline_mode = #tpu.pipeline_mode<synchronous>, transform_indices = @transform_2, window_bounds = array<i64: 5, 128>}, {transform_indices = @transform_3, window_bounds = array<i64: 2, 128>}]} {
    %c0 = arith.constant 0 : index
    %c0_0 = arith.constant 0 : index
    %0 = vector.load %arg1[%c0, %c0_0] : memref<2x16xf32, #tpu.memory_space<vmem>>, vector<2x16xf32>
    %c0_1 = arith.constant 0 : index
    %c0_2 = arith.constant 0 : index
    %1 = vector.load %arg2[%c0_1, %c0_2] : memref<272x128xbf16, #tpu.memory_space<vmem>>, vector<16x128xbf16>
    %2 = arith.truncf %0 : vector<2x16xf32> to vector<2x16xbf16>
    %cst = arith.constant dense<0.000000e+00> : vector<2x128xf32>
    %3 = tpu.matmul %2, %1, %cst {dimension_numbers = #tpu.dot_dimension_numbers<[1], [0], [0], [1], [0, 0, 1, 1], [], []>} : vector<2x16xbf16>, vector<16x128xbf16>, vector<2x128xf32> -> vector<2x128xf32>
    %c0_3 = arith.constant 0 : index
    %c0_4 = arith.constant 0 : index
    %4 = vector.load %arg3[%c0_3, %c0_4] : memref<5x128xf32, #tpu.memory_space<vmem>>, vector<1x128xf32>
    %5 = vector.broadcast %4 : vector<1x128xf32> to vector<2x128xf32>
    %6 = arith.addf %3, %5 : vector<2x128xf32>
    %cst_5 = arith.constant 0.000000e+00 : f32
    %7 = vector.broadcast %cst_5 : f32 to vector<2x128xf32>
    %8 = arith.maximumf %6, %7 : vector<2x128xf32>
    %c16 = arith.constant 16 : index
    %c0_6 = arith.constant 0 : index
    %9 = vector.load %arg2[%c16, %c0_6] : memref<272x128xbf16, #tpu.memory_space<vmem>>, vector<128x128xbf16>
    %10 = arith.truncf %8 : vector<2x128xf32> to vector<2x128xbf16>
    %cst_7 = arith.constant dense<0.000000e+00> : vector<2x128xf32>
    %11 = tpu.matmul %10, %9, %cst_7 {dimension_numbers = #tpu.dot_dimension_numbers<[1], [0], [0], [1], [0, 0, 1, 1], [], []>} : vector<2x128xbf16>, vector<128x128xbf16>, vector<2x128xf32> -> vector<2x128xf32>
    %c1 = arith.constant 1 : index
    %c0_8 = arith.constant 0 : index
    %12 = vector.load %arg3[%c1, %c0_8] : memref<5x128xf32, #tpu.memory_space<vmem>>, vector<1x128xf32>
    %13 = vector.broadcast %12 : vector<1x128xf32> to vector<2x128xf32>
    %14 = arith.addf %11, %13 : vector<2x128xf32>
    %cst_9 = arith.constant 0.000000e+00 : f32
    %15 = vector.broadcast %cst_9 : f32 to vector<2x128xf32>
    %16 = arith.maximumf %14, %15 : vector<2x128xf32>
    %17 = vector.extract_strided_slice %16 {offsets = [0, 0], sizes = [2, 64], strides = [1, 1]} : vector<2x128xf32> to vector<2x64xf32>
    %c144 = arith.constant 144 : index
    %c0_10 = arith.constant 0 : index
    %18 = vector.load %arg2[%c144, %c0_10] : memref<272x128xbf16, #tpu.memory_space<vmem>>, vector<64x128xbf16>
    %19 = arith.truncf %17 : vector<2x64xf32> to vector<2x64xbf16>
    %cst_11 = arith.constant dense<0.000000e+00> : vector<2x128xf32>
    %20 = tpu.matmul %19, %18, %cst_11 {dimension_numbers = #tpu.dot_dimension_numbers<[1], [0], [0], [1], [0, 0, 1, 1], [], []>} : vector<2x64xbf16>, vector<64x128xbf16>, vector<2x128xf32> -> vector<2x128xf32>
    %c2 = arith.constant 2 : index
    %c0_12 = arith.constant 0 : index
    %21 = vector.load %arg3[%c2, %c0_12] : memref<5x128xf32, #tpu.memory_space<vmem>>, vector<1x128xf32>
    %22 = vector.broadcast %21 : vector<1x128xf32> to vector<2x128xf32>
    %23 = arith.addf %20, %22 : vector<2x128xf32>
    %cst_13 = arith.constant 0.000000e+00 : f32
    %24 = vector.broadcast %cst_13 : f32 to vector<2x128xf32>
    %25 = arith.maximumf %23, %24 : vector<2x128xf32>
    %26 = vector.extract_strided_slice %25 {offsets = [0, 0], sizes = [2, 32], strides = [1, 1]} : vector<2x128xf32> to vector<2x32xf32>
    %c208 = arith.constant 208 : index
    %c0_14 = arith.constant 0 : index
    %27 = vector.load %arg2[%c208, %c0_14] : memref<272x128xbf16, #tpu.memory_space<vmem>>, vector<32x128xbf16>
    %28 = arith.truncf %26 : vector<2x32xf32> to vector<2x32xbf16>
    %cst_15 = arith.constant dense<0.000000e+00> : vector<2x128xf32>
    %29 = tpu.matmul %28, %27, %cst_15 {dimension_numbers = #tpu.dot_dimension_numbers<[1], [0], [0], [1], [0, 0, 1, 1], [], []>} : vector<2x32xbf16>, vector<32x128xbf16>, vector<2x128xf32> -> vector<2x128xf32>
    %c3 = arith.constant 3 : index
    %c0_16 = arith.constant 0 : index
    %30 = vector.load %arg3[%c3, %c0_16] : memref<5x128xf32, #tpu.memory_space<vmem>>, vector<1x128xf32>
    %31 = vector.broadcast %30 : vector<1x128xf32> to vector<2x128xf32>
    %32 = arith.addf %29, %31 : vector<2x128xf32>
    %cst_17 = arith.constant 0.000000e+00 : f32
    %33 = vector.broadcast %cst_17 : f32 to vector<2x128xf32>
    %34 = arith.maximumf %32, %33 : vector<2x128xf32>
    %35 = vector.extract_strided_slice %34 {offsets = [0, 0], sizes = [2, 32], strides = [1, 1]} : vector<2x128xf32> to vector<2x32xf32>
    %c240 = arith.constant 240 : index
    %c0_18 = arith.constant 0 : index
    %36 = vector.load %arg2[%c240, %c0_18] : memref<272x128xbf16, #tpu.memory_space<vmem>>, vector<32x128xbf16>
    %37 = arith.truncf %35 : vector<2x32xf32> to vector<2x32xbf16>
    %cst_19 = arith.constant dense<0.000000e+00> : vector<2x128xf32>
    %38 = tpu.matmul %37, %36, %cst_19 {dimension_numbers = #tpu.dot_dimension_numbers<[1], [0], [0], [1], [0, 0, 1, 1], [], []>} : vector<2x32xbf16>, vector<32x128xbf16>, vector<2x128xf32> -> vector<2x128xf32>
    %c4 = arith.constant 4 : index
    %c0_20 = arith.constant 0 : index
    %39 = vector.load %arg3[%c4, %c0_20] : memref<5x128xf32, #tpu.memory_space<vmem>>, vector<1x128xf32>
    %40 = vector.broadcast %39 : vector<1x128xf32> to vector<2x128xf32>
    %41 = arith.addf %38, %40 : vector<2x128xf32>
    %42 = arith.truncf %41 : vector<2x128xf32> to vector<2x128xbf16>
    %c0_21 = arith.constant 0 : index
    %c0_22 = arith.constant 0 : index
    %43 = vector.load %arg4[%c0_21, %c0_22] : memref<2x128xbf16, #tpu.memory_space<vmem>>, vector<2x128xbf16>
    tpu.vector_store %arg4[%c0_21, %c0_22], %42 {strides = array<i32>} : memref<2x128xbf16, #tpu.memory_space<vmem>>, vector<2x128xbf16>,
    return
  }
  func.func @transform_0(%arg0: i32) -> (i32, i32) {
    %c0_i32 = arith.constant 0 : i32
    %c0_i32_0 = arith.constant 0 : i32
    return %arg0, %c0_i32 : i32, i32
  }
  func.func @transform_1(%arg0: i32) -> (i32, i32) {
    %c0_i32 = arith.constant 0 : i32
    %c0_i32_0 = arith.constant 0 : i32
    %c0_i32_1 = arith.constant 0 : i32
    return %c0_i32, %c0_i32_0 : i32, i32
  }
  func.func @transform_2(%arg0: i32) -> (i32, i32) {
    %c0_i32 = arith.constant 0 : i32
    %c0_i32_0 = arith.constant 0 : i32
    %c0_i32_1 = arith.constant 0 : i32
    return %c0_i32, %c0_i32_0 : i32, i32
  }
  func.func @transform_3(%arg0: i32) -> (i32, i32) {
    %c0_i32 = arith.constant 0 : i32
    %c0_i32_0 = arith.constant 0 : i32
    return %arg0, %c0_i32 : i32, i32
  }
}

</mosaic_0001>

<bundles_post_ra>
// kernel: tpu_custom_call.1
= control target key start
LH: loop header
LB: loop body
LE: loop exit
PB: predicated region body
PF: predicated region fallthrough
CT: control target
= control target key end

     0   :  { %8 = vsyncpa [#allocation3], 0  ;;  %s739_s0 = inlined_call_operand.hbm [shape: f32[2,16], index: 0, kind: input, shape index: {}]   ;;  %s740_s1 = inlined_call_operand.hbm [shape: bf16[272,128], index: 1, kind: input, shape index: {}]   ;;  %s741_s2 = inlined_call_operand.hbm [shape: f32[5,128], index: 2, kind: input, shape index: {}]   ;;  %s742_s3 = inlined_call_operand.hbm [shape: bf16[2,128], index: 3, kind: output, shape index: {}]  }
   0x1   :  { %9 = vsyncpa [#allocation6], 0 }
   0x2   :  { %10 = vsyncpa [#allocation4], 0  ;;  %s670_s12 = smov [#allocation5]  }
   0x3   :  { %s26_s13 = sshll.u32 %s670_s12, 4  ;;  %s27_s13 = int_to_ptr.vmem [resolvable:$true] %s26_s13 }
   0x4   :  { %s592_s14 = scalar_lea.vmem %s27_s13, 2176  ;;  %p597_p1 = scmp.lt.s32.totalorder %s27_s13, %s27_s13 }
   0x5   :  { %p593_p0 = scmp.ne.s32.totalorder %s27_s13, %s592_s14  ;;  %p598_p2 = scmp.lt.s32.totalorder %s592_s14, %s592_s14 }
   0x7   :  { %p599_p3 = por %p598_p2, %p597_p1 }
   0x9   :  { %p600_p4 = pnand %p599_p3, %p593_p0 }
   0xb   :  { %603 = shalt.err (!%p600_p4)
}
   0xc   :  { %s671_s15 = smov 64   ;;  %s672_s16 = smov 4  }
   0xd   :  { %32 = dma.hbm_to_vmem [thread:$0]  %s740_s1, 2176, %s27_s13, [#allocation6], %s671_s15, %s671_s15, %s672_s16  }
   0xe   :  { %s673_s19 = smov [#allocation2]   ;;  %s674_s21 = smov [#allocation7]  }
   0xf   :  { %s17_s20 = sshll.u32 %s673_s19, 4  ;;  %s39_s22 = sshll.u32 %s674_s21, 4  ;;  %s18_s20 = int_to_ptr.vmem [resolvable:$true] %s17_s20  ;;  %s40_s22 = int_to_ptr.vmem [resolvable:$true] %s39_s22 }
  0x10   :  { %s612_s23 = scalar_lea.vmem %s18_s20, 32  ;;  %p617_p6 = scmp.lt.s32.totalorder %s18_s20, %s18_s20 }
  0x11   :  { %p613_p5 = scmp.ne.s32.totalorder %s18_s20, %s612_s23  ;;  %p618_p7 = scmp.lt.s32.totalorder %s612_s23, %s612_s23 }
  0x13   :  { %p619_p8 = por %p618_p7, %p617_p6 }
  0x15   :  { %p620_p9 = pnand %p619_p8, %p613_p5 }
  0x17   :  { %623 = shalt.err (!%p620_p9)
}
  0x18   :  { %20 = dma.hbm_to_vmem [thread:$0]  %s739_s0, 32, %s18_s20, [#allocation3]  }
  0x19   :  { %s632_s26 = scalar_lea.vmem %s40_s22, 128  ;;  %p637_p11 = scmp.lt.s32.totalorder %s40_s22, %s40_s22 }
  0x1a   :  { %p633_p10 = scmp.ne.s32.totalorder %s40_s22, %s632_s26  ;;  %p638_p12 = scmp.lt.s32.totalorder %s632_s26, %s632_s26 }
  0x1c   :  { %p639_p13 = por %p638_p12, %p637_p11 }
  0x1e   :  { %p640_p0 = pnand %p639_p13, %p633_p10 }
  0x20   :  { %643 = shalt.err (!%p640_p0)
}
  0x21   :  { %42 = dma.hbm_to_vmem [thread:$0]  %s741_s2, 128, %s40_s22, [#allocation6]  }
  0x22   :  { %664 = dma.done.wait [#allocation3], 32  }
  0x23   :  { %665 = vsyncadd [#allocation3], 4294967264 }
  0x24   :  { %666 = dma.done.wait [#allocation6], 2304  }
  0x25   :  { %667 = vsyncadd [#allocation6], 4294964992  ;;  %v675_v0 = vmov 0.0   ;;  %vm676_vm0 = vmmov 0   ;;  %v567_v1 = vld [vmem:[#allocation5] sm:$0xff]   ;;  %vm68_vm1 = vcmask 130048  }
  0x26   :  { %505 = vmatprep.subr.bf16.mxu0 %v675_v0  ;;  %507 = vmatprep.mubr.msk.bf16.mxu0 %vm676_vm0, %v675_v0  ;;  %v53_v2 = vld [vmem:[#allocation2] sm:$0x3]  ;;  %v568_v4 = vld [vmem:[#allocation5 + $0x40] sm:$0xff]   ;;  %v570_v6 = vld [vmem:[#allocation5 + $0x30] sm:$0xff]   ;;  %vm262_vm2 = vcmask 523264   ;;  %vm329_vm3 = vcmask 261120  }
  0x27   :  { %511 = vmatprep.subr.bf16.mxu1 %v675_v0  ;;  %527 = vmatprep.mubr.msk.bf16.mxu1 %vm676_vm0, %v675_v0  ;;  %v56_v3 = vpack.c.bf16 %v53_v2, %v53_v2  ;;  %v569_v5 = vld [vmem:[#allocation5 + $0x38] sm:$0xff]   ;;  %v571_v7 = vld [vmem:[#allocation5 + $0x28] sm:$0xff]   ;;  %v572_v8 = vld [vmem:[#allocation5 + $0x20] sm:$0xff]   ;;  %s677_s0 = smov [#allocation8]  }
  0x28   :  { %506 = vmatpush3.bf16.msra.mxu0 %v567_v1  ;;  %512 = vmatpush3.bf16.msra.mxu1 %v568_v4  ;;  %v573_v9 = vld [vmem:[#allocation5 + $0x18] sm:$0xff]   ;;  %v574_v10 = vld [vmem:[#allocation5 + $0x10] sm:$0xff]   ;;  %v575_v11 = vld [vmem:[#allocation5 + $0x8] sm:$0xff]   ;;  %s447_s2 = sshll.u32 %s677_s0, 4  ;;  %s448_s2 = int_to_ptr.vmem [resolvable:$true] %s447_s2 }
  0x29   :  { %531 = vmatprep.subr.bf16.mxu0 %v675_v0  ;;  %513 = vmatprep.subr.bf16.mxu1 %v675_v0  ;;  %v576_v12 = vld [vmem:[#allocation5 + $0x60] sm:$0xff]   ;;  %v577_v13 = vld [vmem:[#allocation5 + $0x58] sm:$0xff]   ;;  %v457_v14 = vld [vmem:[#allocation7] ss:$0 sm:$0xff]  ;;  %s644_s28 = scalar_lea.vmem %s448_s2, 16  ;;  %s648_s29 = scalar_lea.vmem %s448_s2, 32 }
  0x2a   :  { %v578_v22 = vld [vmem:[#allocation5 + $0x50] sm:$0xff]   ;;  %v579_v23 = vld [vmem:[#allocation5 + $0x48] sm:$0xff]   ;;  %v582_v40 = vld [vmem:[#allocation5 + $0x80] sm:$0xff]   ;;  %p645_p1 = scmp.ne.s32.totalorder %s448_s2, %s644_s28  ;;  %p649_p2 = scmp.lt.s32.totalorder %s448_s2, %s448_s2 }
  0x2b   :  { %508 = vmatmul.mubr.msk.bf16.vlgmr.msra.gmra.mxu0 %vm68_vm1, %v56_v3  ;;  %v460_v24 = vld [vmem:[#allocation7 + $0x1] ss:$0 sm:$0xff]  ;;  %v580_v30 = vld [vmem:[#allocation5 + $0x70] sm:$0xff]   ;;  %v469_v34 = vld [vmem:[#allocation7 + $0x2] ss:$0 sm:$0xff]  ;;  %p650_p3 = scmp.lt.s32.totalorder %s648_s29, %s644_s28 }
  0x2c   :  { %539 = vmatprep.mubr.msk.bf16.mxu0 %vm676_vm0, %v675_v0  ;;  %514 = vmatpush3.bf16.msra.mxu1 %v569_v5  ;;  %v581_v33 = vld [vmem:[#allocation5 + $0x68] sm:$0xff]   ;;  %v583_v43 = vld [vmem:[#allocation5 + $0x78] sm:$0xff]  }
  0x2d   :  { %515 = vmatprep.subr.bf16.mxu1 %v675_v0  ;;  %532 = vmatpush3.bf16.msra.mxu0 %v576_v12  ;;  %v475_v44 = vld [vmem:[#allocation7 + $0x3] ss:$0 sm:$0xff]  ;;  %v479_v52 = vld [vmem:[#allocation7 + $0x4] ss:$0 sm:$0xff]  ;;  %p651_p4 = por %p650_p3, %p649_p2 }
  0x2e   :  { %533 = vmatprep.subr.bf16.mxu0 %v675_v0 }
  0x2f   :  { %p652_p5 = pnand %p651_p4, %p645_p1 }
  0x30   :  { %516 = vmatpush3.bf16.msra.mxu1 %v570_v6 }
  0x31   :  { %517 = vmatprep.subr.bf16.mxu1 %v675_v0  ;;  %534 = vmatpush3.bf16.msra.mxu0 %v577_v13 }
  0x32   :  { %535 = vmatprep.subr.bf16.mxu0 %v675_v0 }
  0x34   :  { %518 = vmatpush3.bf16.msra.mxu1 %v571_v7 }
  0x35   :  { %519 = vmatprep.subr.bf16.mxu1 %v675_v0  ;;  %536 = vmatpush3.bf16.msra.mxu0 %v578_v22 }
  0x36   :  { %537 = vmatprep.subr.bf16.mxu0 %v675_v0 }
  0x38   :  { %520 = vmatpush3.bf16.msra.mxu1 %v572_v8 }
  0x39   :  { %521 = vmatprep.subr.bf16.mxu1 %v675_v0  ;;  %538 = vmatpush3.bf16.msra.mxu0 %v579_v23 }
  0x3a   :  { %543 = vmatprep.subr.bf16.mxu0 %v675_v0 }
  0x3c   :  { %522 = vmatpush3.bf16.msra.mxu1 %v573_v9 }
  0x3d   :  { %523 = vmatprep.subr.bf16.mxu1 %v675_v0 }
  0x40   :  { %524 = vmatpush3.bf16.msra.mxu1 %v574_v10 }
  0x41   :  { %525 = vmatprep.subr.bf16.mxu1 %v675_v0 }
  0x44   :  { %526 = vmatpush3.bf16.msra.mxu1 %v575_v11 }
  0xeb   :  { %v106_v15 = vpop.f32.mrf.mxu0 }
  0xec   :  { %v107_v16 = vadd.f32 %v457_v14, %v106_v15 }
  0xed   :  { %v509_v17 = vpop.f32.mrf.mxu0 }
  0xee   :  { %v112_v18 = vmax.f32 %v107_v16, 0.0 }
  0xef   :  { %v109_v19 = vpop.f32.mrf.mxu0 }
  0xf0   :  { %v129_v20 = vpack.c.bf16 %v112_v18, %v112_v18 }
  0xf1   :  { %v510_v21 = vpop.f32.mrf.mxu0 }
  0xf2   :  { %528 = vmatmul.mubr.bf16.vlgmr.msra.gmra.mxu1 %v129_v20 }
 0x1b2   :  { %v217_v25 = vpop.f32.mrf.mxu1 }
 0x1b3   :  { %v218_v26 = vadd.f32 %v460_v24, %v217_v25 }
 0x1b4   :  { %v529_v27 = vpop.f32.mrf.mxu1 }
 0x1b5   :  { %v223_v28 = vmax.f32 %v218_v26, 0.0 }
 0x1b6   :  { %v220_v29 = vpop.f32.mrf.mxu1 }
 0x1b7   :  { %v232_v31 = vpack.c.bf16 %v223_v28, %v223_v28 }
 0x1b8   :  { %v530_v32 = vpop.f32.mrf.mxu1 }
 0x1b9   :  { %540 = vmatmul.mubr.msk.bf16.vlgmr.msra.gmra.mxu0 %vm262_vm2, %v232_v31 }
 0x1ba   :  { %544 = vmatpush3.bf16.msra.mxu0 %v580_v30  ;;  %547 = vmatprep.mubr.msk.bf16.mxu0 %vm676_vm0, %v675_v0 }
 0x1bb   :  { %545 = vmatprep.subr.bf16.mxu0 %v675_v0 }
 0x1be   :  { %546 = vmatpush3.bf16.msra.mxu0 %v581_v33 }
 0x1bf   :  { %551 = vmatprep.subr.bf16.mxu0 %v675_v0 }
 0x279   :  { %v300_v35 = vpop.f32.mrf.mxu0 }
 0x27a   :  { %v301_v36 = vadd.f32 %v469_v34, %v300_v35 }
 0x27b   :  { %v541_v37 = vpop.f32.mrf.mxu0 }
 0x27c   :  { %v306_v38 = vmax.f32 %v301_v36, 0.0 }
 0x27d   :  { %v303_v39 = vpop.f32.mrf.mxu0 }
 0x27e   :  { %v311_v41 = vpack.c.bf16 %v306_v38, %v306_v38 }
 0x27f   :  { %v542_v42 = vpop.f32.mrf.mxu0 }
 0x280   :  { %548 = vmatmul.mubr.msk.bf16.vlgmr.msra.gmra.mxu0 %vm329_vm3, %v311_v41 }
 0x281   :  { %552 = vmatpush3.bf16.msra.mxu0 %v582_v40  ;;  %555 = vmatprep.mubr.msk.bf16.mxu0 %vm676_vm0, %v675_v0 }
 0x282   :  { %553 = vmatprep.subr.bf16.mxu0 %v675_v0 }
 0x285   :  { %554 = vmatpush3.bf16.msra.mxu0 %v583_v43 }
 0x340   :  { %v367_v45 = vpop.f32.mrf.mxu0 }
 0x341   :  { %v368_v46 = vadd.f32 %v475_v44, %v367_v45 }
 0x342   :  { %v549_v47 = vpop.f32.mrf.mxu0 }
 0x343   :  { %v373_v48 = vmax.f32 %v368_v46, 0.0 }
 0x344   :  { %v370_v49 = vpop.f32.mrf.mxu0 }
 0x345   :  { %v378_v50 = vpack.c.bf16 %v373_v48, %v373_v48 }
 0x346   :  { %v550_v51 = vpop.f32.mrf.mxu0 }
 0x347   :  { %556 = vmatmul.mubr.msk.bf16.vlgmr.msra.gmra.mxu0 %vm329_vm3, %v378_v50 }
 0x407   :  { %v433_v53 = vpop.f32.mrf.mxu0 }
 0x408   :  { %v434_v54 = vadd.f32 %v479_v52, %v433_v53 }
 0x409   :  { %v557_v55 = vpop.f32.mrf.mxu0 }
 0x40a   :  { %v439_v56 = vpack.c.bf16 %v434_v54, %v434_v54 }
 0x40b   :  { %v436_v57 = vpop.f32.mrf.mxu0 }
 0x40c   :  { %440 = vst [vmem:[#allocation8] sm:$0x1] %v439_v56 }
 0x40d   :  { %v558_v58 = vpop.f32.mrf.mxu0 }
 0x40e   :  { %655 = shalt.err (!%p652_p5)
}
 0x40f   :  { %450 = dma.vmem_to_hbm [thread:$0]  %s448_s2, 16, %s742_s3, [#allocation4]  }
 0x410   :  { %668 = dma.done.wait [#allocation4], 16  }
 0x411   :  { %669 = vsyncadd [#allocation4], 4294967280 }
 0x412   :  { %454 = vsyncpa [#allocation3], 1 }
 0x413   :  { %455 = vsyncpa [#allocation6], 1 }
 0x414   :  { %456 = vsyncpa [#allocation4], 1 }

</bundles_post_ra>
